<compile_context>
chip_gen: v6e
topology: v6e:2x2x1
jax: 0.10.0
libtpu: 0.0.40
codegen_flags: <defaults>
</compile_context>

<pallas_src>
import numpy as np

import jax
import jax.numpy as jnp
from jax.experimental import pallas as pl
from jax.experimental.pallas import tpu as pltpu


def _space_to_batch_kernel(x_ref, csel_ref, rsel_ref, o_ref):
    """x_ref: (cb, th*s, wt);  csel: (wt, wt);  rsel: (th*s, th*s);
    o_ref: (s, s, cb, th, wt//s)."""
    s, _, cb, th, wt_out = o_ref.shape
    TH = th * s
    Wt = wt_out * s

    # Matmuls run in f32 (exact for one-hot selection of f32/bf16 data).
    v = x_ref[...].astype(jnp.float32)                           # (cb, TH, Wt)

    # 1) Lane-side deinterleave (the W / j stride) on the MXU:
    #    a[q, j*wt_out + wo] = v[q, wo*s + j]
    a = jnp.dot(v.reshape(cb * TH, Wt), csel_ref[...],
                preferred_element_type=jnp.float32)              # (cb*TH, Wt)

    # 2) Row-side regroup (the H / i stride), also on the MXU:
    #    b[p, i*th + t] = a_t[p, t*s + i]
    a = jnp.swapaxes(a.reshape(cb, TH, Wt), -1, -2)              # (cb, Wt, TH)
    b = jnp.dot(a.reshape(cb * Wt, TH), rsel_ref[...],
                preferred_element_type=jnp.float32)              # (cb*Wt, TH)
    z = jnp.swapaxes(b.reshape(cb, Wt, TH), -1, -2)              # (cb, s*th, s*wt_out)
    # z[c, i*th + t, j*wt_out + wo] == x[c, t*s + i, wo*s + j]

    # 3) Split the s*s residue tiles (static, unit-stride slices) and store once.
    rows = []
    for i in range(s):
        cols = []
        for j in range(s):
            cols.append(z[:, i * th:(i + 1) * th,
                          j * wt_out:(j + 1) * wt_out])          # (cb, th, wt_out)
        rows.append(jnp.stack(cols, axis=0))                     # (s, cb, th, wt_out)
    o_ref[...] = jnp.stack(rows, axis=0).astype(o_ref.dtype)     # (s, s, cb, th, wt_out)


def _selectors(TH, Wt, s):
    """One-hot permutation matrices (src index -> packed (residue, coarse) index)."""
    th, wt_out = TH // s, Wt // s
    w = np.arange(Wt)
    csel = np.zeros((Wt, Wt), np.float32)
    csel[w, (w % s) * wt_out + (w // s)] = 1.0   # src lane wo*s+j -> col j*wt_out+wo
    h = np.arange(TH)
    rsel = np.zeros((TH, TH), np.float32)
    rsel[h, (h % s) * th + (h // s)] = 1.0       # src row  t*s+i  -> col i*th+t
    return jnp.asarray(csel), jnp.asarray(rsel)


def _choose_tiles(C, h_out, w_out, s, itemsize, budget_bytes=1 << 20):
    """Pick (cb, th, wt): per-step input block (cb, th*s, wt) ~<= budget bytes."""
    W = w_out * s
    # W tile: a multiple of 128*s that divides W keeps both the input block and
    # the output block 128-lane aligned and the MXU selectors small; otherwise
    # fall back to the full width (block == full dim is always legal).
    wt = W
    if W > 1024 and W % (128 * s) == 0:
        step = 128 * s
        for cand in range((1024 // step) * step, 0, -step):
            if W % cand == 0:
                wt = cand
                break
    # H tile: divisor of h_out, either 8-aligned or the full h_out.
    th_cands = [d for d in range(h_out, 0, -1)
                if h_out % d == 0 and (d % 8 == 0 or d == h_out)]
    cb_cands = [d for d in range(C, 0, -1) if C % d == 0]
    best = (cb_cands[-1], th_cands[-1])
    best_bytes = 0
    for th in th_cands:
        for cb in cb_cands:
            nbytes = cb * th * s * wt * itemsize
            if nbytes <= budget_bytes and nbytes > best_bytes:
                best, best_bytes = (cb, th), nbytes
    cb, th = best
    return cb, th, wt


def space_to_batch(x_nchw, block_size):
    s = int(block_size)
    N, C, H, W = x_nchw.shape
    assert H % s == 0 and W % s == 0, "spatial dims must be divisible by block_size"
    h_out, w_out = H // s, W // s
    if s == 1:
        return x_nchw

    cb, th, wt = _choose_tiles(C, h_out, w_out, s, x_nchw.dtype.itemsize)
    TH, wt_out = th * s, wt // s
    csel, rsel = _selectors(TH, wt, s)

    grid = (N, C // cb, h_out // th, W // wt)

    out6 = pl.pallas_call(
        _space_to_batch_kernel,
        out_shape=jax.ShapeDtypeStruct((N, s, s, C, h_out, w_out), x_nchw.dtype),
        grid_spec=pltpu.PrefetchScalarGridSpec(
            num_scalar_prefetch=0,
            grid=grid,
            in_specs=[
                pl.BlockSpec((None, cb, TH, wt),
                             lambda n, c, h, w: (n, c, h, w)),
                pl.BlockSpec((wt, wt), lambda n, c, h, w: (0, 0)),
                pl.BlockSpec((TH, TH), lambda n, c, h, w: (0, 0)),
            ],
            out_specs=pl.BlockSpec((None, s, s, cb, th, wt_out),
                                   lambda n, c, h, w: (n, 0, 0, c, h, w)),
        ),
        compiler_params=pltpu.CompilerParams(
            dimension_semantics=("parallel", "parallel", "parallel", "parallel"),
            vmem_limit_bytes=32 * 1024 * 1024,  # working set ~8 MiB; safe on v5e/v6e/v7x
        ),
    )(x_nchw, csel, rsel)

    # Free reshape: (N, s, s, C, h_out, w_out) and (N*s^2, C, h_out, w_out)
    # share the same memory order -> no extra HBM pass.
    return out6.reshape(N * s * s, C, h_out, w_out)


def _reference_space_to_batch(x, s):
    """Pure-jnp replica of SpaceToDim(scale, dims=(-2,-1), dim=0) on 4D NCHW."""
    N, C, H, W = x.shape
    y = x.reshape(N, C, H // s, s, W // s, s)
    y = jnp.transpose(y, (0, 3, 5, 1, 2, 4))
    return y.reshape(N * s * s, C, H // s, W // s)


if __name__ == "__main__":
    key = jax.random.PRNGKey(0)
    N, C, H, W = 2, 4, 16, 16
    block_size = 2

    x = jax.random.normal(key, (N, C, H, W), dtype=jnp.float32)

    out = jax.block_until_ready(space_to_batch(x, block_size))

    ref = _reference_space_to_batch(x, block_size)
    assert out.shape == (N * block_size * block_size, C, H // block_size, W // block_size)
    assert out.dtype == x.dtype
    assert jnp.allclose(out, ref), "Pallas space-to-batch mismatch vs reference"

    print("KERNEL_OK")
</pallas_src>

<mosaic_0001>
module attributes {stable_mosaic.version = 11 : i64} {
  func.func @_space_to_batch_kernel(%arg0: i32, %arg1: i32, %arg2: i32, %arg3: i32, %arg4: memref<1x4x16x16xf32, #tpu.memory_space<vmem>>, %arg5: memref<16x16xf32, #tpu.memory_space<vmem>>, %arg6: memref<16x16xf32, #tpu.memory_space<vmem>>, %arg7: memref<1x2x2x4x8x8xf32, #tpu.memory_space<vmem>>) attributes {dimension_semantics = [#tpu.dimension_semantics<parallel>, #tpu.dimension_semantics<parallel>, #tpu.dimension_semantics<parallel>, #tpu.dimension_semantics<parallel>], iteration_bounds = array<i64: 2, 1, 1, 1>, scalar_prefetch = 0 : i64, scratch_operands = 0 : i64, tpu.core_type = #tpu.core_type<tc>, window_params = [{transform_indices = @transform_0, window_bounds = array<i64: 1, 4, 16, 16>}, {pipeline_mode = #tpu.pipeline_mode<synchronous>, transform_indices = @transform_1, window_bounds = array<i64: 16, 16>}, {pipeline_mode = #tpu.pipeline_mode<synchronous>, transform_indices = @transform_2, window_bounds = array<i64: 16, 16>}, {transform_indices = @transform_3, window_bounds = array<i64: 1, 2, 2, 4, 8, 8>}]} {
    %c0 = arith.constant 0 : index
    %c0_0 = arith.constant 0 : index
    %c0_1 = arith.constant 0 : index
    %c0_2 = arith.constant 0 : index
    %0 = vector.load %arg4[%c0, %c0_0, %c0_1, %c0_2] : memref<1x4x16x16xf32, #tpu.memory_space<vmem>>, vector<1x4x16x16xf32>
    %1 = vector.shape_cast %0 : vector<1x4x16x16xf32> to vector<4x16x16xf32>
    %2 = vector.shape_cast %1 : vector<4x16x16xf32> to vector<64x16xf32>
    %c0_3 = arith.constant 0 : index
    %c0_4 = arith.constant 0 : index
    %3 = vector.load %arg5[%c0_3, %c0_4] : memref<16x16xf32, #tpu.memory_space<vmem>>, vector<16x16xf32>
    %cst = arith.constant dense<0.000000e+00> : vector<64x16xf32>
    %4 = tpu.matmul %2, %3, %cst {dimension_numbers = #tpu.dot_dimension_numbers<[1], [0], [0], [1], [0, 0, 1, 1], [], []>} : vector<64x16xf32>, vector<16x16xf32>, vector<64x16xf32> -> vector<64x16xf32>
    %5 = vector.shape_cast %4 : vector<64x16xf32> to vector<4x16x16xf32>
    %6 = tpu.transpose %5, [0, 2, 1] : vector<4x16x16xf32> -> vector<4x16x16xf32>
    %7 = vector.shape_cast %6 : vector<4x16x16xf32> to vector<64x16xf32>
    %c0_5 = arith.constant 0 : index
    %c0_6 = arith.constant 0 : index
    %8 = vector.load %arg6[%c0_5, %c0_6] : memref<16x16xf32, #tpu.memory_space<vmem>>, vector<16x16xf32>
    %cst_7 = arith.constant dense<0.000000e+00> : vector<64x16xf32>
    %9 = tpu.matmul %7, %8, %cst_7 {dimension_numbers = #tpu.dot_dimension_numbers<[1], [0], [0], [1], [0, 0, 1, 1], [], []>} : vector<64x16xf32>, vector<16x16xf32>, vector<64x16xf32> -> vector<64x16xf32>
    %10 = vector.shape_cast %9 : vector<64x16xf32> to vector<4x16x16xf32>
    %11 = tpu.transpose %10, [0, 2, 1] : vector<4x16x16xf32> -> vector<4x16x16xf32>
    %12 = vector.extract_strided_slice %11 {offsets = [0, 0, 0], sizes = [4, 8, 8], strides = [1, 1, 1]} : vector<4x16x16xf32> to vector<4x8x8xf32>
    %13 = vector.extract_strided_slice %11 {offsets = [0, 0, 8], sizes = [4, 8, 8], strides = [1, 1, 1]} : vector<4x16x16xf32> to vector<4x8x8xf32>
    %14 = vector.shape_cast %12 : vector<4x8x8xf32> to vector<1x4x8x8xf32>
    %15 = vector.shape_cast %13 : vector<4x8x8xf32> to vector<1x4x8x8xf32>
    %16 = tpu.concatenate %14, %15 in 0 : vector<1x4x8x8xf32>, vector<1x4x8x8xf32> -> vector<2x4x8x8xf32>
    %17 = vector.extract_strided_slice %11 {offsets = [0, 8, 0], sizes = [4, 8, 8], strides = [1, 1, 1]} : vector<4x16x16xf32> to vector<4x8x8xf32>
    %18 = vector.extract_strided_slice %11 {offsets = [0, 8, 8], sizes = [4, 8, 8], strides = [1, 1, 1]} : vector<4x16x16xf32> to vector<4x8x8xf32>
    %19 = vector.shape_cast %17 : vector<4x8x8xf32> to vector<1x4x8x8xf32>
    %20 = vector.shape_cast %18 : vector<4x8x8xf32> to vector<1x4x8x8xf32>
    %21 = tpu.concatenate %19, %20 in 0 : vector<1x4x8x8xf32>, vector<1x4x8x8xf32> -> vector<2x4x8x8xf32>
    %22 = vector.shape_cast %16 : vector<2x4x8x8xf32> to vector<1x2x4x8x8xf32>
    %23 = vector.shape_cast %21 : vector<2x4x8x8xf32> to vector<1x2x4x8x8xf32>
    %24 = tpu.concatenate %22, %23 in 0 : vector<1x2x4x8x8xf32>, vector<1x2x4x8x8xf32> -> vector<2x2x4x8x8xf32>
    %c0_8 = arith.constant 0 : index
    %c0_9 = arith.constant 0 : index
    %c0_10 = arith.constant 0 : index
    %c0_11 = arith.constant 0 : index
    %c0_12 = arith.constant 0 : index
    %c0_13 = arith.constant 0 : index
    %25 = vector.load %arg7[%c0_8, %c0_9, %c0_10, %c0_11, %c0_12, %c0_13] : memref<1x2x2x4x8x8xf32, #tpu.memory_space<vmem>>, vector<1x2x2x4x8x8xf32>
    %26 = vector.shape_cast %25 : vector<1x2x2x4x8x8xf32> to vector<2x2x4x8x8xf32>
    %27 = vector.shape_cast %24 : vector<2x2x4x8x8xf32> to vector<1x2x2x4x8x8xf32>
    tpu.vector_store %arg7[%c0_8, %c0_9, %c0_10, %c0_11, %c0_12, %c0_13], %27 {strides = array<i32>} : memref<1x2x2x4x8x8xf32, #tpu.memory_space<vmem>>, vector<1x2x2x4x8x8xf32>,
    return
  }
  func.func @transform_0(%arg0: i32, %arg1: i32, %arg2: i32, %arg3: i32) -> (i32, i32, i32, i32) {
    %c0_i32 = arith.constant 0 : i32
    return %arg0, %arg1, %arg2, %arg3 : i32, i32, i32, i32
  }
  func.func @transform_1(%arg0: i32, %arg1: i32, %arg2: i32, %arg3: i32) -> (i32, i32) {
    %c0_i32 = arith.constant 0 : i32
    %c0_i32_0 = arith.constant 0 : i32
    %c0_i32_1 = arith.constant 0 : i32
    return %c0_i32, %c0_i32_0 : i32, i32
  }
  func.func @transform_2(%arg0: i32, %arg1: i32, %arg2: i32, %arg3: i32) -> (i32, i32) {
    %c0_i32 = arith.constant 0 : i32
    %c0_i32_0 = arith.constant 0 : i32
    %c0_i32_1 = arith.constant 0 : i32
    return %c0_i32, %c0_i32_0 : i32, i32
  }
  func.func @transform_3(%arg0: i32, %arg1: i32, %arg2: i32, %arg3: i32) -> (i32, i32, i32, i32, i32, i32) {
    %c0_i32 = arith.constant 0 : i32
    %c0_i32_0 = arith.constant 0 : i32
    %c0_i32_1 = arith.constant 0 : i32
    return %arg0, %c0_i32, %c0_i32_0, %arg1, %arg2, %arg3 : i32, i32, i32, i32, i32, i32
  }
}

</mosaic_0001>

<bundles_post_ra>
// kernel: tpu_custom_call.1
= control target key start
LH: loop header
LB: loop body
LE: loop exit
PB: predicated region body
PF: predicated region fallthrough
CT: control target
= control target key end

     0   :  { %8 = vsyncpa [#allocation3], 0  ;;  %s1598_s0 = inlined_call_operand.hbm [shape: f32[2,4,16,16], index: 0, kind: input, shape index: {}]   ;;  %s1599_s1 = inlined_call_operand.hbm [shape: f32[16,16], index: 1, kind: input, shape index: {}]   ;;  %s1600_s2 = inlined_call_operand.hbm [shape: f32[16,16], index: 2, kind: input, shape index: {}]   ;;  %s1601_s3 = inlined_call_operand.hbm [shape: f32[2,2,2,4,8,8], index: 3, kind: output, shape index: {}]  }
   0x1   :  { %10 = vsyncpa [#allocation3 + $0x1], 0 }
   0x2   :  { %11 = vsyncpa [#allocation6], 0 }
   0x3   :  { %12 = vsyncpa [#allocation4], 0 }
   0x4   :  { %14 = vsyncpa [#allocation4 + $0x1], 0  ;;  %s1349_s12 = smov 0   ;;  %s1351_s13 = smov 0  }
   0x5   :  { %s1353_s14 = smov 0   ;;  %s1355_s15 = smov 0  }
   0x6   :  { %s1357_s16 = smov 0   ;;  %s1359_s17 = smov 0  }
   0x7 LB: > { %s976_s18 = sadd.s32 4294967295, %s1318_s17   ;;  %s977_s19 = sadd.s32 4294967294, %s1318_s17   ;;  %s1318_s17 = sphi %s1359_s17, %s20_s17   ;;  %s1314_s16 = sphi %s1357_s16, %s1618_s16   ;;  %s1310_s15 = sphi %s1355_s15, %s1617_s15   ;;  %s1306_s14 = sphi %s1353_s14, %s1616_s14   ;;  %s1302_s13 = sphi %s1351_s13, %s1615_s13   ;;  %s1298_s12 = sphi %s1349_s12, %s1614_s12  }
   0x8   : > { %p72_p0 = scmp.ne.s32.totalorder %s1302_s13, %s1298_s12  ;;  %p1383_p1 = scmp.eq.s32.totalorder %s976_s18, 0 }
   0x9   : > { %p1387_p2 = scmp.eq.s32.totalorder %s976_s18, 1  ;;  %p150_p3 = scmp.eq.s32.totalorder %s977_s19, 1 }
   0xa   : > { %p1393_p4 = por %p1383_p1, %p72_p0  ;;  %p978_p5 = scmp.ge.s32.totalorder %s1318_s17, 1 }
   0xb   : > { %p1398_p6 = por %p150_p3, %p72_p0  ;;  %p157_p7 = scmp.lt.s32.totalorder %s1318_s17, 3 }
   0xc   : > { %s1320_s25 = smov [#allocation5]   ;;  %s1321_s28 = smov [#allocation7]  }
   0xd   : > { %s1606_s23 = scalar_select %p1398_p6, 1, 0 }
   0xe   : > { %p1403_p8 = pnand %p978_p5, %p157_p7  ;;  %s169_s26 = sshll.u32 %s1320_s25, 4  ;;  %s170_s26 = int_to_ptr.vmem [resolvable:$true] %s169_s26 }
   0xf   : > { %s182_s29 = sshll.u32 %s1321_s28, 4  ;;  %s1165_s30 = scalar_lea.vmem %s170_s26, 256  ;;  %s183_s29 = int_to_ptr.vmem [resolvable:$true] %s182_s29 }
  0x10   : > { %p1077_p9 = pneg %p1403_p8  ;;  %p1166_p13 = scmp.ne.s32.totalorder %s170_s26, %s1165_s30 }
  0x11   : > { %p1173_p5 = scmp.lt.s32.totalorder %s170_s26, %s170_s26  ;;  %p1174_p7 = scmp.lt.s32.totalorder %s1165_s30, %s1165_s30 }
  0x12   : > { %p1412_p11 = pnand %p1077_p9, %p1383_p1 }
  0x13   : > { %p1175_p10 = por %p1174_p7, %p1173_p5 }
  0x14   : > { %p1156_p12 = pneg %p1412_p11 }
  0x16   : > { %p1168_p0 = pnand %p1166_p13, %p1156_p12 }
  0x18   : > { %p1169_p3 = pneg %p1168_p0 }
  0x1a   : > { %p1176_p9 = pnand %p1175_p10, %p1169_p3 }
  0x1c   : > { %1179 = shalt.err (!%p1176_p9)
}
  0x1d   : > { %s1602_s4 = smov 128   ;;  %s1323_s5 = smov 8  }
  0x1e   : > { %1080 = dma.hbm_to_vmem [thread:$0]  (!%p1412_p11), %s1599_s1, 256, %s170_s26, [#allocation6], %s1602_s4, %s1602_s4, %s1323_s5  }
  0x1f   : > { %s1191_s8 = scalar_lea.vmem %s183_s29, 256  ;;  %p1199_p10 = scmp.lt.s32.totalorder %s183_s29, %s183_s29 }
  0x20   : > { %p1192_p13 = scmp.ne.s32.totalorder %s183_s29, %s1191_s8  ;;  %p1200_p3 = scmp.lt.s32.totalorder %s1191_s8, %s1191_s8 }
  0x22   : > { %p1194_p0 = pnand %p1192_p13, %p1156_p12  ;;  %p1201_p7 = por %p1200_p3, %p1199_p10 }
  0x24   : > { %p1195_p5 = pneg %p1194_p0 }
  0x26   : > { %p1202_p9 = pnand %p1201_p7, %p1195_p5 }
  0x28   : > { %1205 = shalt.err (!%p1202_p9)
}
  0x29   : > { %1083 = dma.hbm_to_vmem [thread:$0]  (!%p1412_p11), %s1600_s2, 256, %s183_s29, [#allocation6], %s1602_s4, %s1602_s4, %s1323_s5  }
  0x2a   : > { %s46_s11 = sadd.s32 1, %s1314_s16  ;;  %s59_s18 = sadd.s32 1, %s1306_s14 }
  0x2b   : > { %p48_p12 = scmp.ge.s32.totalorder %s46_s11, 2  ;;  %p66_p13 = scmp.ne.s32.totalorder %s1306_s14, %s1302_s13 }
  0x2c   : > { %p67_p0 = scmp.eq.s32.totalorder %s1318_s17, 0  ;;  %p1094_p5 = scmp.lt.s32.totalorder %s1318_s17, 2 }
  0x2d   : > { %s1620_s11 = smov (%p48_p12, %s46_s11), 0  ;;  %p1450_p3 = por %p1387_p2, %p66_p13 }
  0x2e   : > { %p68_p10 = por %p67_p0, %p66_p13  ;;  %s50_s25 = ssub.s32 %s1314_s16, %s1620_s11 }
  0x2f   : > { %s196_s26 = sand.u32 1, %s1306_s14   ;;  %p57_p7 = scmp.eq.s32.totalorder %s50_s25, 0 }
  0x30   : > { %s982_s27 = sshll.u32 %s196_s26, 6  ;;  %s1011_s28 = sshll.u32 %s1314_s16, 10 }
  0x31   : > { %s1459_s29 = scalar_select %p57_p7, %s1306_s14, %s59_s18  }
  0x32   : > { %s212_s7 = scalar_lea.hbm %s1598_s0, %s1011_s28  ;;  %s200_s8 = scalar_lea.vmem [#allocation2], %s982_s27 }
  0x33   : > { %s213_s9 = sshll.u32 %s200_s8, 4  ;;  %p1466_p11 = pnand %p1094_p5, %p68_p10  ;;  %s214_s9 = int_to_ptr.vmem [resolvable:$true] %s213_s9 }
  0x34   : > { %s197_s10 = scalar_lea.sflag [#allocation3], %s196_s26  ;;  %s1219_s25 = scalar_lea.vmem %s214_s9, 1024 }
  0x35   : > { %p1208_p2 = pneg %p1466_p11  ;;  %p1220_p9 = scmp.ne.s32.totalorder %s214_s9, %s1219_s25 }
  0x36   : > { %s1324_s18 = smov [#allocation2]  }
  0x37   : > { %p1222_p12 = pnand %p1220_p9, %p1208_p2  ;;  %s1224_s4 = sshll.u32 %s1324_s18, 4  ;;  %s1225_s4 = int_to_ptr.vmem [resolvable:$false] %s1224_s4 }
  0x38   : > { %s1226_s28 = scalar_lea.vmem %s1225_s4, 2048  ;;  %p1227_p0 = scmp.lt.s32.totalorder %s214_s9, %s1225_s4 }
  0x39   : > { %p1223_p13 = pneg %p1222_p12  ;;  %p1228_p7 = scmp.lt.s32.totalorder %s1226_s28, %s1219_s25 }
  0x3b   : > { %p1229_p6 = por %p1228_p7, %p1227_p0 }
  0x3d   : > { %p1230_p5 = pnand %p1229_p6, %p1223_p13 }
  0x3f   : > { %1233 = shalt.err (!%p1230_p5)
}
  0x40   : > { %s1611_s27 = smov 128   ;;  %225 = sbr.rel (%p1403_p8) target bundleno = 870 (0x366), region = 32 }
  0x41   : > { %1087 = dma.hbm_to_vmem [thread:$0]  (!%p1466_p11), %s212_s7, 1024, %s214_s9, %s197_s10, %s1611_s27, %s1611_s27, %s1323_s5  }
  0x42   : > { %s1480_s26 = sand.u32 (!%p1403_p8), 1, %s1302_s13  }
  0x43   : > { %s986_s4 = sshll.u32 (!%p1403_p8), %s1480_s26, 6  ;;  %s228_s30 = scalar_lea.sflag (!%p1403_p8), [#allocation3], %s1480_s26 }
  0x44   : > { %s231_s6 = scalar_lea.vmem (!%p1403_p8), [#allocation2], %s986_s4 }
  0x45   : > { %1285 = dma.done.wait (%p1393_p4), %s228_s30, 1024  }
  0x46   : > { %1287 = vsyncadd (%p1393_p4), %s228_s30, 4294966272 }
  0x47   : > { %1289 = dma.done.wait (%p1383_p1), [#allocation6], 512  }
  0x48   : > { %1291 = vsyncadd (%p1383_p1), [#allocation6], 4294966784  ;;  %vm275_vm0 = vcmask 130048   ;;  %v274_v0 = vld [vmem:[#allocation5 + $0x8] sm:$0xff]  ;;  %v273_v1 = vld [vmem:[#allocation5] sm:$0xff]  ;;  %s989_s20 = sshll.u32 %s1480_s26, 7 }
  0x49   : > { %v265_v2 = vld [vmem:[%s231_s6] sm:$0xff]  ;;  %1033 = vmatprep.subr.mxu0 %v274_v0  ;;  %v266_v3 = vld [vmem:[%s231_s6 + $0x8] sm:$0xff]  ;;  %v267_v4 = vld [vmem:[%s231_s6 + $0x10] sm:$0xff]  ;;  %vm824_vm1 = vcmask 64512   ;;  %s1509_s22 = scalar_lea.vmem [#allocation8], %s989_s20  ;;  %s1325_s24 = smov 120  }
  0x4a   : > { %1037 = vmatprep.mubr.msk.f32.mxu0 %vm275_vm0, %v265_v2  ;;  %1034 = vmatpush3.msra.mxu0 %v274_v0  ;;  %v268_v5 = vld [vmem:[%s231_s6 + $0x18] sm:$0xff]  ;;  %v269_v6 = vld [vmem:[%s231_s6 + $0x20] sm:$0xff]  ;;  %v270_v7 = vld [vmem:[%s231_s6 + $0x28] sm:$0xff]  ;;  %s1012_s5 = sshll.u32 %s1310_s15, 11  ;;  %s859_s7 = sshll.u32 %s1509_s22, 4  ;;  %s1548_s7 = int_to_ptr.vmem [resolvable:$true] %s859_s7 }
  0x4b   : > { %1035 = vmatprep.subr.mxu0 %v273_v1  ;;  %v271_v8 = vld [vmem:[%s231_s6 + $0x30] sm:$0xff]  ;;  %v272_v9 = vld [vmem:[%s231_s6 + $0x38] sm:$0xff]  ;;  %s1546_s21 = scalar_lea.hbm %s1601_s3, %s1012_s5  ;;  %s842_s15 = scalar_lea.sflag [#allocation4], %s1480_s26 }
  0x4c   : > { %1036 = vmatpush3.msra.mxu0 %v273_v1  ;;  %v534_v10 = vld [vmem:[#allocation7 + $0x8] sm:$0xff]  ;;  %v533_v12 = vld [vmem:[#allocation7] sm:$0xff]  ;;  %s1234_s10 = scalar_lea.vmem %s1548_s7, 2048  ;;  %s1326_s25 = smov [#allocation8]  }
  0x4d   : > { %1038 = vmatmul.mubr.msk.f32.vlgmr.msra.gmra.mxu0 %vm275_vm0, %v266_v3  ;;  %1049 = vmatprep.subr.mxu1 %v534_v10  ;;  %p1235_p1 = scmp.ne.s32.totalorder %s1548_s7, %s1234_s10  ;;  %s1238_s18 = sshll.u32 %s1326_s25, 4  ;;  %s1239_s18 = int_to_ptr.vmem [resolvable:$false] %s1238_s18 }
  0x4e   : > { %1040 = vmatprep.mubr.msk.f32.mxu0 %vm275_vm0, %v267_v4  ;;  %1050 = vmatpush3.msra.mxu1 %v534_v10  ;;  %s1240_s28 = scalar_lea.vmem %s1239_s18, 4096  ;;  %p1241_p8 = scmp.lt.s32.totalorder %s1548_s7, %s1239_s18 }
  0x4f   : > { %1051 = vmatprep.subr.mxu1 %v533_v12  ;;  %p1236_p4 = pnand %p1235_p1, %p1450_p3  ;;  %p1242_p10 = scmp.lt.s32.totalorder %s1240_s28, %s1234_s10 }
  0x50   : > { %1052 = vmatpush3.msra.mxu1 %v533_v12 }
  0x51   : > { %1041 = vmatmul.mubr.msk.f32.gmra.mxu0 %vm275_vm0, %v268_v5  ;;  %p1237_p6 = pneg %p1236_p4  ;;  %p1243_p11 = por %p1242_p10, %p1241_p8 }
  0x52   : > { %1043 = vmatprep.mubr.msk.f32.mxu0 %vm275_vm0, %v269_v6 }
  0x53   : > { %p1244_p2 = pnand %p1243_p11, %p1237_p6 }
  0x55   : > { %1044 = vmatmul.mubr.msk.f32.gmra.mxu0 %vm275_vm0, %v270_v7 }
  0x56   : > { %1046 = vmatprep.mubr.msk.f32.mxu0 %vm275_vm0, %v271_v8 }
  0x59   : > { %1047 = vmatmul.mubr.msk.f32.gmra.mxu0 %vm275_vm0, %v272_v9 }
 0x10d   : > { %v1039_v11 = vpop.f32.mrf.mxu0 }
 0x10f   : > { %v366_v13 = vpop.f32.mrf.mxu0 }
 0x110   : > { %405 = vxpose.xlu0.b32.start [1/2] (short) (narrow) %v366_v13, 16 }
 0x111   : > { %v1042_v14 = vpop.f32.mrf.mxu0 }
 0x113   : > { %v376_v15 = vpop.f32.mrf.mxu0 }
 0x114   : > { %406 = vxpose.xlu0.b32.end [2/2] (short) (narrow) %v1039_v11, 16  ;;  %437 = vxpose.xlu1.b32.start [1/2] (short) (narrow) %v376_v15, 16 }
 0x115   : > { %v1045_v16 = vpop.f32.mrf.mxu0 }
 0x117   : > { %v386_v17 = vpop.f32.mrf.mxu0 }
 0x118   : > { %438 = vxpose.xlu1.b32.end [2/2] (short) (narrow) %v1042_v14, 16  ;;  %469 = vxpose.xlu0.b32.start [1/2] (short) (narrow) %v386_v17, 16 }
 0x119   : > { %v1048_v18 = vpop.f32.mrf.mxu0 }
 0x11b   : > { %v396_v19 = vpop.f32.mrf.mxu0 }
 0x11c   : > { %470 = vxpose.xlu0.b32.end [2/2] (short) (narrow) %v1045_v16, 16  ;;  %501 = vxpose.xlu1.b32.start [1/2] (short) (narrow) %v396_v19, 16 }
 0x120   : > { %502 = vxpose.xlu1.b32.end [2/2] (short) (narrow) %v1048_v18, 16 }
 0x18c   : > { %v421_v20 = vpop.trf.xlu0 }
 0x18d   : > { %1053 = vmatprep.mubr.msk.f32.mxu1 %vm275_vm0, %v421_v20 }
 0x190   : > { %v422_v21 = vpop.trf.xlu0  ;;  %v453_v22 = vpop.trf.xlu1 }
 0x191   : > { %1054 = vmatmul.mubr.msk.f32.vlgmr.msra.gmra.mxu1 %vm275_vm0, %v422_v21 }
 0x192   : > { %1056 = vmatprep.mubr.msk.f32.mxu1 %vm275_vm0, %v453_v22 }
 0x194   : > { %v454_v23 = vpop.trf.xlu1  ;;  %v485_v24 = vpop.trf.xlu0 }
 0x195   : > { %1057 = vmatmul.mubr.msk.f32.gmra.mxu1 %vm275_vm0, %v454_v23 }
 0x196   : > { %1059 = vmatprep.mubr.msk.f32.mxu1 %vm275_vm0, %v485_v24 }
 0x198   : > { %v486_v25 = vpop.trf.xlu0  ;;  %v517_v26 = vpop.trf.xlu1 }
 0x199   : > { %1060 = vmatmul.mubr.msk.f32.gmra.mxu1 %vm275_vm0, %v486_v25 }
 0x19a   : > { %1062 = vmatprep.mubr.msk.f32.mxu1 %vm275_vm0, %v517_v26 }
 0x19c   : > { %v518_v27 = vpop.trf.xlu1 }
 0x19d   : > { %1063 = vmatmul.mubr.msk.f32.gmra.mxu1 %vm275_vm0, %v518_v27 }
 0x251   : > { %v1055_v28 = vpop.f32.mrf.mxu1 }
 0x253   : > { %v625_v29 = vpop.f32.mrf.mxu1 }
 0x254   : > { %664 = vxpose.xlu0.b32.start [1/2] (short) (narrow) %v625_v29, 16 }
 0x255   : > { %v1058_v30 = vpop.f32.mrf.mxu1 }
 0x257   : > { %v635_v31 = vpop.f32.mrf.mxu1 }
 0x258   : > { %665 = vxpose.xlu0.b32.end [2/2] (short) (narrow) %v1055_v28, 16  ;;  %696 = vxpose.xlu1.b32.start [1/2] (short) (narrow) %v635_v31, 16 }
 0x259   : > { %v1061_v32 = vpop.f32.mrf.mxu1 }
 0x25b   : > { %v645_v33 = vpop.f32.mrf.mxu1 }
 0x25c   : > { %728 = vxpose.xlu0.b32.start [1/2] (short) (narrow) %v645_v33, 16  ;;  %697 = vxpose.xlu1.b32.end [2/2] (short) (narrow) %v1058_v30, 16 }
 0x25d   : > { %v1064_v34 = vpop.f32.mrf.mxu1 }
 0x25f   : > { %v655_v35 = vpop.f32.mrf.mxu1 }
 0x260   : > { %729 = vxpose.xlu0.b32.end [2/2] (short) (narrow) %v1061_v32, 16  ;;  %760 = vxpose.xlu1.b32.start [1/2] (short) (narrow) %v655_v35, 16 }
 0x264   : > { %761 = vxpose.xlu1.b32.end [2/2] (short) (narrow) %v1064_v34, 16 }
 0x2d0   : > { %v680_v36 = vpop.trf.xlu0 }
 0x2d1   : > { %825 = vst.msk [vmem:[%s1509_s22] sm:$0xff] %vm824_vm1, %v680_v36  ;;  %796 = vrot.lane.b32.xlu0 %v680_v36, %s1325_s24 }
 0x2d4   : > { %v712_v37 = vpop.trf.xlu1  ;;  %v681_v38 = vpop.trf.xlu0 }
 0x2d5   : > { %826 = vst.msk [vmem:[%s1509_s22 + $0x8] sm:$0xff] %vm824_vm1, %v712_v37  ;;  %798 = vrot.lane.b32.xlu1 %v712_v37, %s1325_s24  ;;  %833 = vst.msk [vmem:[%s1509_s22 + $0x40] sm:$0xff] %vm824_vm1, %v681_v38 }
 0x2d8   : > { %v744_v39 = vpop.trf.xlu0  ;;  %v713_v40 = vpop.trf.xlu1 }
 0x2d9   : > { %812 = vrot.lane.b32.xlu1 %v681_v38, %s1325_s24  ;;  %827 = vst.msk [vmem:[%s1509_s22 + $0x10] sm:$0xff] %vm824_vm1, %v744_v39  ;;  %834 = vst.msk [vmem:[%s1509_s22 + $0x48] sm:$0xff] %vm824_vm1, %v713_v40  ;;  %814 = vrot.lane.b32.xlu0 %v713_v40, %s1325_s24 }
 0x2dc   : > { %v776_v41 = vpop.trf.xlu1  ;;  %v745_v42 = vpop.trf.xlu0 }
 0x2dd   : > { %800 = vrot.lane.b32.xlu1 %v744_v39, %s1325_s24  ;;  %828 = vst.msk [vmem:[%s1509_s22 + $0x18] sm:$0xff] %vm824_vm1, %v776_v41  ;;  %835 = vst.msk [vmem:[%s1509_s22 + $0x50] sm:$0xff] %vm824_vm1, %v745_v42 }
 0x2e0   : > { %v777_v43 = vpop.trf.xlu1 }
 0x2e1   : > { %802 = vrot.lane.b32.xlu1 %v776_v41, %s1325_s24  ;;  %836 = vst.msk [vmem:[%s1509_s22 + $0x58] sm:$0xff] %vm824_vm1, %v777_v43  ;;  %818 = vrot.lane.b32.xlu0 %v777_v43, %s1325_s24 }
 0x2e5   : > { %816 = vrot.lane.b32.xlu1 %v745_v42, %s1325_s24 }
 0x343   : > { %v797_v44 = vpop.permute.xlu0 %796 }
 0x344   : > { %829 = vst.msk [vmem:[%s1509_s22 + $0x20] sm:$0xff] %vm824_vm1, %v797_v44 }
 0x347   : > { %v799_v45 = vpop.permute.xlu1 %798 }
 0x348   : > { %830 = vst.msk [vmem:[%s1509_s22 + $0x28] sm:$0xff] %vm824_vm1, %v799_v45 }
 0x34b   : > { %v813_v46 = vpop.permute.xlu1 %812  ;;  %v815_v47 = vpop.permute.xlu0 %814 }
 0x34c   : > { %837 = vst.msk [vmem:[%s1509_s22 + $0x60] sm:$0xff] %vm824_vm1, %v813_v46  ;;  %838 = vst.msk [vmem:[%s1509_s22 + $0x68] sm:$0xff] %vm824_vm1, %v815_v47 }
 0x34f   : > { %v801_v48 = vpop.permute.xlu1 %800 }
 0x350   : > { %831 = vst.msk [vmem:[%s1509_s22 + $0x30] sm:$0xff] %vm824_vm1, %v801_v48 }
 0x353   : > { %v803_v49 = vpop.permute.xlu1 %802  ;;  %v819_v50 = vpop.permute.xlu0 %818 }
 0x354   : > { %832 = vst.msk [vmem:[%s1509_s22 + $0x38] sm:$0xff] %vm824_vm1, %v803_v49  ;;  %840 = vst.msk [vmem:[%s1509_s22 + $0x78] sm:$0xff] %vm824_vm1, %v819_v50 }
 0x357   : > { %v817_v51 = vpop.permute.xlu1 %816 }
 0x358   : > { %839 = vst.msk [vmem:[%s1509_s22 + $0x70] sm:$0xff] %vm824_vm1, %v817_v51 }
 0x359   : > { %1247 = shalt.err (!%p1244_p2)
}
 0x35a   : > { %s1248_s27 = scalar_lea.hbm %s1546_s21, 2048  ;;  %s1252_s6 = scalar_lea.hbm %s1601_s3, 4096 }
 0x35b   : > { %p1249_p9 = scmp.ne.s32.totalorder %s1546_s21, %s1248_s27  ;;  %p1253_p0 = scmp.lt.s32.totalorder %s1546_s21, %s1601_s3 }
 0x35c   : > { %p1254_p7 = scmp.lt.s32.totalorder %s1252_s6, %s1248_s27 }
 0x35d   : > { %p1250_p12 = pnand %p1249_p9, %p1450_p3 }
 0x35e   : > { %p1255_p5 = por %p1254_p7, %p1253_p0 }
 0x35f   : > { %p1251_p13 = pneg %p1250_p12 }
 0x361   : > { %p1256_p1 = pnand %p1255_p5, %p1251_p13 }
 0x363   : > { %1259 = shalt.err (!%p1256_p1)
}
 0x364   : > { %s1327_s24 = smov 128   ;;  %s1328_s5 = smov 8  }
 0x365   : > { %1075 = dma.vmem_to_hbm [thread:$0]  (%p1450_p3), %s1548_s7, 2048, %s1546_s21, %s842_s15, %s1327_s24, %s1327_s24, %s1328_s5  }
 0x366 PF: > { %s874_s8 = sand.u32 1, %s1298_s12   ;;  %p1612_p4 = scmp.ne.s32.totalorder %s1606_s23, 0 }
 0x367   : > { %p1613_p6 = scmp.ge.s32.totalorder %s1318_s17, 2  ;;  %s875_s9 = scalar_lea.sflag [#allocation4], %s874_s8 }
 0x369   : > { %p1089_p8 = pnand %p1613_p6, %p1612_p4 }
 0x36b   : > { %p1090_p10 = pneg %p1089_p8 }
 0x36d   : > { %1293 = dma.done.wait (%p1090_p10), %s875_s9, 2048  }
 0x36e   : > { %1295 = vsyncadd (%p1090_p10), %s875_s9, 4294965248  ;;  %s20_s17 = sadd.s32 1, %s1318_s17   ;;  %s1614_s12 = smov %s1302_s13 }
 0x36f   : > { %p17_p11 = scmp.ge.s32.totalorder %s20_s17, 4   ;;  %s1615_s13 = smov %s1306_s14 }
 0x370   : > { %s1616_s14 = smov %s1459_s29  ;;  %s1617_s15 = smov %s1314_s16 }
 0x371   : > { %s1618_s16 = smov %s1620_s11  ;;  %19 = sbr.rel (!%p17_p11) target bundleno = 7 (0x7), region = 85 }
 0x376   :  { %880 = vsyncpa [#allocation3], 1 }
 0x377   :  { %882 = vsyncpa [#allocation3 + $0x1], 1 }
 0x378   :  { %883 = vsyncpa [#allocation6], 1 }
 0x379   :  { %884 = vsyncpa [#allocation4], 1 }
 0x37a   :  { %886 = vsyncpa [#allocation4 + $0x1], 1 }

</bundles_post_ra>
